<compile_context>
chip_gen: v5e
topology: v5e:2x2
jax: 0.10.0
libtpu: 0.0.40
codegen_flags: <defaults>
</compile_context>

<pallas_src>
import numpy as np
import jax
import jax.numpy as jnp
from jax.experimental import pallas as pl
from jax.experimental.pallas import tpu as pltpu

# ----------------------------- model constants (synthetic, small) -----------
N_JOINTS = 24
N_BETAS = 100
N_VERTS = 1024            # synthetic small mesh (real RaBit mesh is ~14k verts)
F_FLAT = 3 * N_VERTS
TN = 1536                 # lane tile for the shape-blend kernel (2 parallel steps)
TV = 1024                 # vertex lane tile for the skinning kernel

assert F_FLAT % TN == 0
assert N_VERTS % TV == 0


# ----------------------------- Pallas kernels --------------------------------
def _shape_blend_kernel(beta_ref, sd_ref, vt_ref, out_ref):
    # beta_ref: (B, 100) f32
    # sd_ref  : (100, TN) bf16, plane-major  (bf16 stream halves the dominant HBM bytes)
    # vt_ref  : (1, TN) f32
    # out_ref : (B, TN) f32
    sd = sd_ref[...].astype(jnp.float32)
    out_ref[...] = (
        jnp.dot(beta_ref[...], sd, preferred_element_type=jnp.float32)
        + vt_ref[...]
    )


def _skin_kernel(wT_ref, g_ref, v_ref, o_ref):
    # wT_ref: (24, TV)     LBS weights, vertices on lanes (resident across the batch axis)
    # g_ref : (1, 12, 24)  per-batch joint transforms, "input-coordinate major" rows:
    #                      row (3*c_in + c_out) holds T[c_out, c_in]; the global
    #                      translation is already folded into the c_in==3 rows.
    # v_ref : (1, 3, TV)   rest-pose vertices, plane-major
    # o_ref : (1, 3, TV)   posed vertices, plane-major — ONE fused lane-dense store,
    #                      no concatenate copy.
    Tt = jnp.dot(g_ref[0], wT_ref[...], preferred_element_type=jnp.float32)  # (12, TV) MXU
    v = v_ref[0]                                                              # (3, TV)
    o_ref[0] = (
        Tt[0:3] * v[0:1, :]
        + Tt[3:6] * v[1:2, :]
        + Tt[6:9] * v[2:3, :]
        + Tt[9:12]                               # translation rows (incl. global trans)
    )


# ----------------------------- Pallas wrappers --------------------------------
def shape_blend(beta, shapedirs_pm_bf16, v_template_pm_flat):
    B = beta.shape[0]
    F = shapedirs_pm_bf16.shape[1]
    cost = pl.CostEstimate(
        flops=2 * B * N_BETAS * F,
        transcendentals=0,
        bytes_accessed=N_BETAS * F * 2 + B * N_BETAS * 4 + F * 4 + B * F * 4,
    )
    return pl.pallas_call(
        _shape_blend_kernel,
        out_shape=jax.ShapeDtypeStruct((B, F), jnp.float32),
        grid_spec=pltpu.PrefetchScalarGridSpec(
            num_scalar_prefetch=0,
            grid=(F // TN,),                      # 2 parallel steps -> both v7x TCs busy
            in_specs=[
                pl.BlockSpec((B, N_BETAS), lambda j: (0, 0)),
                pl.BlockSpec((N_BETAS, TN), lambda j: (0, j)),
                pl.BlockSpec((1, TN), lambda j: (0, j)),
            ],
            out_specs=pl.BlockSpec((B, TN), lambda j: (0, j)),
        ),
        compiler_params=pltpu.CompilerParams(dimension_semantics=("parallel",)),
        cost_estimate=cost,
    )(beta, shapedirs_pm_bf16, v_template_pm_flat)


def lbs_skin(weights_T, G12t, t_posed_pm):
    # weights_T: (24, N) f32, G12t: (B, 12, 24) f32, t_posed_pm: (B, 3, N) f32
    B, _, N = t_posed_pm.shape
    cost = pl.CostEstimate(
        flops=2 * B * 12 * N_JOINTS * N + 7 * B * 3 * N,
        transcendentals=0,
        bytes_accessed=N_JOINTS * N * 4 + B * 12 * N_JOINTS * 4 + 2 * B * 3 * N * 4,
    )
    return pl.pallas_call(
        _skin_kernel,
        out_shape=jax.ShapeDtypeStruct((B, 3, N), jnp.float32),
        grid_spec=pltpu.PrefetchScalarGridSpec(
            num_scalar_prefetch=0,
            # batch on the fast (trailing) axis: the (24, TV) weights tile keeps the
            # same block index across b, so it stays resident instead of re-DMA'ing.
            grid=(N // TV, B),
            in_specs=[
                pl.BlockSpec((N_JOINTS, TV), lambda i, b: (0, i)),
                pl.BlockSpec((1, 12, N_JOINTS), lambda i, b: (b, 0, 0)),
                pl.BlockSpec((1, 3, TV), lambda i, b: (b, 0, i)),
            ],
            out_specs=pl.BlockSpec((1, 3, TV), lambda i, b: (b, 0, i)),
        ),
        compiler_params=pltpu.CompilerParams(
            dimension_semantics=("parallel", "parallel")
        ),
        cost_estimate=cost,
    )(weights_T, G12t, t_posed_pm)


# ----------------------------- plain-JAX glue ---------------------------------
def rodrigues(r):
    # r: (B, K, 3) axis-angle -> (B, K, 3, 3) rotation matrices
    B, K, _ = r.shape
    theta = jnp.linalg.norm(r, axis=2, keepdims=True)
    theta = jnp.maximum(theta, 1e-6)
    r_hat = r / theta
    z = jnp.zeros((B, K, 1), jnp.float32)
    m = jnp.concatenate(
        [z, -r_hat[:, :, 2:3], r_hat[:, :, 1:2],
         r_hat[:, :, 2:3], z, -r_hat[:, :, 0:1],
         -r_hat[:, :, 1:2], r_hat[:, :, 0:1], z],
        axis=2,
    ).reshape(B, K, 3, 3)
    i_cube = jnp.broadcast_to(jnp.eye(3, dtype=jnp.float32), (1, K, 3, 3))
    r_hat_e = r_hat[..., None]                       # (B,K,3,1)
    rrT = jnp.matmul(r_hat_e, jnp.swapaxes(r_hat_e, 3, 2))
    cos = jnp.cos(theta)[..., None]
    sin = jnp.sin(theta)[..., None]
    return cos * i_cube + (1.0 - cos) * rrT + sin * m


def kinematic_chain_G1(R, J, parent):
    # R: (B,24,3,3), J: (B,24,3) -> G1 (B,24,4,4) world-relative joint transforms.
    # Level-batched: one batched (B,L,4,4) matmul per tree depth instead of 23
    # dependent tiny matmuls (the serial chain dominated wall-clock at B=2).
    B = R.shape[0]
    parent = np.asarray(parent, dtype=np.int64)

    # local translations (root uses its own joint position)
    t_loc = J - J[:, np.maximum(parent, 0), :]
    t_loc = t_loc.at[:, 0, :].set(J[:, 0, :])

    # local homogeneous transforms (B, 24, 4, 4)
    top = jnp.concatenate([R, t_loc[..., None]], axis=3)                     # (B,24,3,4)
    bottom = jnp.broadcast_to(
        jnp.array([0.0, 0.0, 0.0, 1.0], jnp.float32), (B, N_JOINTS, 1, 4)
    )
    G_loc = jnp.concatenate([top, bottom], axis=2)                           # (B,24,4,4)

    # joints grouped by depth (static, from the numpy parent table)
    depth = np.zeros(N_JOINTS, np.int32)
    for i in range(1, N_JOINTS):
        depth[i] = depth[parent[i]] + 1

    G = G_loc
    for d in range(1, int(depth.max()) + 1):
        idx = np.nonzero(depth == d)[0]
        G = G.at[:, idx].set(jnp.matmul(G[:, parent[idx]], G_loc[:, idx]))

    Jh = jnp.concatenate(
        [J, jnp.zeros((B, N_JOINTS, 1), jnp.float32)], axis=2
    ).reshape(B, N_JOINTS, 4, 1)
    GJ = jnp.matmul(G, Jh)                                                   # (B,24,4,1)
    packed = jnp.concatenate(
        [jnp.zeros((B, N_JOINTS, 4, 3), jnp.float32), GJ], axis=3
    )
    return G - packed                                                        # (B,24,4,4)


def regress_keypoints_pm(verts_pm, n_joint_clusters, joint_chunk,
                         n_extra=0, extra_chunk=0):
    # verts_pm: (B, 3, N) plane-major.  (max + min)/2 of each contiguous vertex
    # cluster, done as ONE reshape + reduction per cluster family.
    # TODO(synk): the real joint2index clusters are ragged; a gather-based path
    # (or the loop reference) is required there — this trick assumes contiguous,
    # equal-size slices, which holds for the synthetic model.
    B = verts_pm.shape[0]
    parts = [jnp.zeros((B, 3, 1), jnp.float32)]                 # cluster 0 = RootNode
    seg = verts_pm[:, :, : n_joint_clusters * joint_chunk]
    seg = seg.reshape(B, 3, n_joint_clusters, joint_chunk)
    parts.append(0.5 * (jnp.max(seg, axis=3) + jnp.min(seg, axis=3)))
    if n_extra:
        seg2 = verts_pm[:, :, : n_extra * extra_chunk]
        seg2 = seg2.reshape(B, 3, n_extra, extra_chunk)
        parts.append(0.5 * (jnp.max(seg2, axis=3) + jnp.min(seg2, axis=3)))
    return jnp.transpose(jnp.concatenate(parts, axis=2), (0, 2, 1))  # (B, nkp, 3)


def regress_keypoints_ref(verts, cluster_slices, extra=None):
    # reference (loop) version on the PyTorch (B, N, 3) layout
    B = verts.shape[0]
    pts = [jnp.zeros((B, 3), jnp.float32)]
    for (s, e) in cluster_slices[1:]:
        seg = verts[:, s:e, :]
        pts.append((jnp.max(seg, axis=1) + jnp.min(seg, axis=1)) * 0.5)
    if extra is not None:
        for (s, e) in extra:
            seg = verts[:, s:e, :]
            pts.append((jnp.max(seg, axis=1) + jnp.min(seg, axis=1)) * 0.5)
    return jnp.stack(pts, axis=1)


# ----------------------------- synthetic model params -------------------------
def build_synthetic_model(key):
    k1, k2, k3, k4 = jax.random.split(key, 4)
    # PyTorch convention: flat index = vertex*3 + coord (interleaved)
    shapedirs_raw = jax.random.normal(k1, (N_BETAS, F_FLAT), jnp.float32) * 0.01
    # Canonical blendshape weights are stored in bf16 (halves the dominant HBM
    # stream of the memory-bound shape-blend kernel); the reference consumes the
    # same de-quantized values so both paths agree numerically.
    shapedirs_bf16 = shapedirs_raw.astype(jnp.bfloat16)
    shapedirs = shapedirs_bf16.astype(jnp.float32)              # de-quantized (reference)
    v_template = jax.random.normal(k2, (N_VERTS, 3), jnp.float32)
    w_raw = jax.random.uniform(k3, (N_VERTS, N_JOINTS), jnp.float32)
    weights = w_raw / jnp.sum(w_raw, axis=1, keepdims=True)     # LBS weights sum to 1
    # (weights stay f32: they are small, resident across the batch grid axis, and
    #  the trans-fold optimization is only exact because they sum to exactly 1.)

    # --- one-time host-side re-layout to plane-major / lane-dense forms -------
    shapedirs_pm_bf16 = jnp.transpose(
        shapedirs_bf16.reshape(N_BETAS, N_VERTS, 3), (0, 2, 1)
    ).reshape(N_BETAS, F_FLAT)                                  # x-plane | y-plane | z-plane
    v_template_pm_flat = jnp.transpose(v_template, (1, 0)).reshape(1, F_FLAT)
    weights_T = jnp.transpose(weights, (1, 0))                  # (24, N)

    # kinematic tree (parent[i] < i), real model loads ktree_table.npy
    parent = np.full(N_JOINTS, -1, dtype=np.int32)
    for i in range(1, N_JOINTS):
        parent[i] = (i - 1) // 2
    # pose reorder index (real model derives it from pose_order.npy)
    reorder_index = np.arange(N_JOINTS, dtype=np.int32)
    # joint2index clusters: cluster 0 = RootNode (no verts), 1..23 contiguous slices
    chunk = N_VERTS // (N_JOINTS - 1)
    cluster_slices = [None] + [((i - 1) * chunk, i * chunk) for i in range(1, N_JOINTS)]
    # additional 7 keypoint index sets (toe/thumb/nose/ear in the real model)
    add_chunk = N_VERTS // 7
    additional_slices = [(i * add_chunk, (i + 1) * add_chunk) for i in range(7)]
    # beta-normalization constants (processMaxMin)
    range_mat = jnp.abs(jax.random.normal(k4, (N_BETAS,), jnp.float32)) + 0.5
    minus_mat = -0.5 * range_mat
    return dict(
        shapedirs=shapedirs, v_template=v_template, weights=weights,
        shapedirs_pm_bf16=shapedirs_pm_bf16,
        v_template_pm_flat=v_template_pm_flat,
        weights_T=weights_T,
        parent=parent, reorder_index=reorder_index,
        joint_chunk=chunk, cluster_slices=cluster_slices,
        extra_chunk=add_chunk, additional_slices=additional_slices,
        range_mat=range_mat, minus_mat=minus_mat,
    )


# ----------------------------- forward ----------------------------------------
def rabit_forward(model, beta, pose, trans, beta_norm=False, theta_norm=False):
    B = beta.shape[0]
    pose = pose.reshape(B, -1, 3)
    pose = pose[:, model["reorder_index"], :]
    if beta_norm:
        beta = beta * model["range_mat"][None, :] + model["minus_mat"][None, :]
    if theta_norm:
        pose = (pose - 0.5) * 3.1415926

    # --- shape blendshapes: Pallas kernel A (bf16 stream, plane-major output) --
    v_shaped_pm_flat = shape_blend(
        beta, model["shapedirs_pm_bf16"], model["v_template_pm_flat"]
    )
    t_posed_pm = v_shaped_pm_flat.reshape(B, 3, N_VERTS)        # (B, 3, N) lane-dense

    # --- joint regression + kinematic chain (24 joints, glue) -----------------
    J = regress_keypoints_pm(t_posed_pm, N_JOINTS - 1, model["joint_chunk"])  # (B,24,3)
    R = rodrigues(pose)                                         # (B,24,3,3)
    G1 = kinematic_chain_G1(R, J, model["parent"])              # (B,24,4,4)

    # rows 0..2 of the 4x4, global trans folded into the translation column
    # (exact because LBS weights sum to 1), reordered input-coordinate major so the
    # skinning kernel's epilogue is one fused (3,TV) expression.
    G34 = G1[:, :, :3, :]                                       # (B,24,3,4)
    G34 = G34.at[:, :, :, 3].add(trans[:, None, :])             # fold global translation
    G12t = jnp.transpose(G34, (0, 3, 2, 1)).reshape(B, 12, N_JOINTS)  # (B,12,24)

    # --- LBS skinning: Pallas kernel B (lane-dense, single store) --------------
    posed_pm = lbs_skin(model["weights_T"], G12t, t_posed_pm)   # (B,3,N)

    # --- skeleton keypoints (24 clusters + 7 extra), fused reductions ----------
    skeleton = regress_keypoints_pm(
        posed_pm, N_JOINTS - 1, model["joint_chunk"], 7, model["extra_chunk"]
    )

    # return in the PyTorch (B, N, 3) convention (one cheap layout op at the end)
    posed_vertices = jnp.transpose(posed_pm, (0, 2, 1))

    # TODO(synk): Eye_reconstructor / openmesh PolyMesh eye-mesh rebuild has no
    # Pallas equivalent (numpy/openmesh object construction); eyes_list omitted.
    eyes_list = []
    return posed_vertices, skeleton, eyes_list


# ----------------------------- reference (pure jnp) ----------------------------
def _reference_forward(model, beta, pose, trans):
    B = beta.shape[0]
    pose = pose.reshape(B, -1, 3)[:, model["reorder_index"], :]
    v_shaped = beta @ model["shapedirs"] + model["v_template"].reshape(1, -1)
    t_posed = v_shaped.reshape(B, N_VERTS, 3)
    J = regress_keypoints_ref(t_posed, model["cluster_slices"])
    R = rodrigues(pose)
    G1 = kinematic_chain_G1(R, J, model["parent"])
    G_r = G1.reshape(B, N_JOINTS, 16)
    T = jnp.einsum("vj,bjk->bvk", model["weights"], G_r).reshape(B, N_VERTS, 4, 4)
    rest_h = jnp.concatenate(
        [t_posed, jnp.ones((B, N_VERTS, 1), jnp.float32)], axis=2
    )
    posed = jnp.einsum("bvij,bvj->bvi", T, rest_h)[:, :, :3] + trans[:, None, :]
    skeleton = regress_keypoints_ref(
        posed, model["cluster_slices"], extra=model["additional_slices"]
    )
    return posed, skeleton


# ----------------------------- main --------------------------------------------
if __name__ == "__main__":
    key = jax.random.PRNGKey(0)
    km, kb, kp, kt = jax.random.split(key, 4)

    model = build_synthetic_model(km)

    B = 2
    beta = jax.random.normal(kb, (B, N_BETAS), jnp.float32) * 0.1
    pose = jax.random.normal(kp, (B, 72), jnp.float32) * 0.2
    trans = jax.random.normal(kt, (B, 3), jnp.float32)

    posed_vertices, skeleton, eyes_list = rabit_forward(model, beta, pose, trans)
    jax.block_until_ready((posed_vertices, skeleton))

    # sanity check against the pure-JAX reference of the LBS pipeline
    ref_posed, ref_skel = _reference_forward(model, beta, pose, trans)
    np.testing.assert_allclose(
        np.asarray(posed_vertices), np.asarray(ref_posed), rtol=1e-4, atol=1e-4
    )
    np.testing.assert_allclose(
        np.asarray(skeleton), np.asarray(ref_skel), rtol=1e-4, atol=1e-4
    )
    assert posed_vertices.shape == (B, N_VERTS, 3)
    assert skeleton.shape == (B, N_JOINTS + 7, 3)

    print("KERNEL_OK")
</pallas_src>

<mosaic_0001>
module attributes {stable_mosaic.version = 11 : i64} {
  func.func @_shape_blend_kernel(%arg0: i32, %arg1: memref<2x100xf32, #tpu.memory_space<vmem>>, %arg2: memref<100x1536xbf16, #tpu.memory_space<vmem>>, %arg3: memref<1x1536xf32, #tpu.memory_space<vmem>>, %arg4: memref<2x1536xf32, #tpu.memory_space<vmem>>) attributes {dimension_semantics = [#tpu.dimension_semantics<parallel>], iteration_bounds = array<i64: 2>, scalar_prefetch = 0 : i64, scratch_operands = 0 : i64, tpu.core_type = #tpu.core_type<tc>, window_params = [{pipeline_mode = #tpu.pipeline_mode<synchronous>, transform_indices = @transform_0, window_bounds = array<i64: 2, 100>}, {transform_indices = @transform_1, window_bounds = array<i64: 100, 1536>}, {transform_indices = @transform_2, window_bounds = array<i64: 1, 1536>}, {transform_indices = @transform_3, window_bounds = array<i64: 2, 1536>}]} {
    %c0 = arith.constant 0 : index
    %c0_0 = arith.constant 0 : index
    %0 = vector.load %arg2[%c0, %c0_0] : memref<100x1536xbf16, #tpu.memory_space<vmem>>, vector<100x1536xbf16>
    %1 = arith.extf %0 : vector<100x1536xbf16> to vector<100x1536xf32>
    %c0_1 = arith.constant 0 : index
    %c0_2 = arith.constant 0 : index
    %2 = vector.load %arg1[%c0_1, %c0_2] : memref<2x100xf32, #tpu.memory_space<vmem>>, vector<2x100xf32>
    %cst = arith.constant dense<0.000000e+00> : vector<2x1536xf32>
    %3 = tpu.matmul %2, %1, %cst {dimension_numbers = #tpu.dot_dimension_numbers<[1], [0], [0], [1], [0, 0, 1, 1], [], []>} : vector<2x100xf32>, vector<100x1536xf32>, vector<2x1536xf32> -> vector<2x1536xf32>
    %c0_3 = arith.constant 0 : index
    %c0_4 = arith.constant 0 : index
    %4 = vector.load %arg3[%c0_3, %c0_4] : memref<1x1536xf32, #tpu.memory_space<vmem>>, vector<1x1536xf32>
    %5 = vector.broadcast %4 : vector<1x1536xf32> to vector<2x1536xf32>
    %6 = arith.addf %3, %5 : vector<2x1536xf32>
    %c0_5 = arith.constant 0 : index
    %c0_6 = arith.constant 0 : index
    %7 = vector.load %arg4[%c0_5, %c0_6] : memref<2x1536xf32, #tpu.memory_space<vmem>>, vector<2x1536xf32>
    tpu.vector_store %arg4[%c0_5, %c0_6], %6 {strides = array<i32>} : memref<2x1536xf32, #tpu.memory_space<vmem>>, vector<2x1536xf32>,
    return
  }
  func.func @transform_0(%arg0: i32) -> (i32, i32) {
    %c0_i32 = arith.constant 0 : i32
    %c0_i32_0 = arith.constant 0 : i32
    %c0_i32_1 = arith.constant 0 : i32
    return %c0_i32, %c0_i32_0 : i32, i32
  }
  func.func @transform_1(%arg0: i32) -> (i32, i32) {
    %c0_i32 = arith.constant 0 : i32
    %c0_i32_0 = arith.constant 0 : i32
    return %c0_i32, %arg0 : i32, i32
  }
  func.func @transform_2(%arg0: i32) -> (i32, i32) {
    %c0_i32 = arith.constant 0 : i32
    %c0_i32_0 = arith.constant 0 : i32
    return %c0_i32, %arg0 : i32, i32
  }
  func.func @transform_3(%arg0: i32) -> (i32, i32) {
    %c0_i32 = arith.constant 0 : i32
    %c0_i32_0 = arith.constant 0 : i32
    return %c0_i32, %arg0 : i32, i32
  }
}

</mosaic_0001>

<bundles_post_ra>
// kernel: tpu_custom_call.1
= control target key start
LH: loop header
LB: loop body
LE: loop exit
PB: predicated region body
PF: predicated region fallthrough
CT: control target
= control target key end

     0   :  { %s1546_s0 = inlined_call_operand.hbm [shape: f32[2,100], index: 0, kind: input, shape index: {}]   ;;  %s1547_s1 = inlined_call_operand.hbm [shape: bf16[100,3072], index: 1, kind: input, shape index: {}]   ;;  %s1548_s2 = inlined_call_operand.hbm [shape: f32[1,3072], index: 2, kind: input, shape index: {}]   ;;  %s1549_s3 = inlined_call_operand.hbm [shape: f32[2,3072], index: 3, kind: output, shape index: {}]  }
   0x1   :  { %1550 = sst [smem:[#allocation12_spill]] %s1546_s0 }
   0x2   :  { %8 = vsyncpa [#allocation3], 0 }
   0x3   :  { %9 = vsyncpa [#allocation6], 0 }
   0x4   :  { %11 = vsyncpa [#allocation6 + $0x1], 0 }
   0x5   :  { %12 = vsyncpa [#allocation4], 0 }
   0x6   :  { %14 = vsyncpa [#allocation4 + $0x1], 0  ;;  %s1238_s12 = smov 0   ;;  %s1240_s13 = smov 0  }
   0x7   :  { %s1242_s14 = smov 0   ;;  %s1244_s15 = smov 0  }
   0x8 LB: > { %s1259_s16 = sadd.s32 1, %s1212_s15   ;;  %s48_s17 = sadd.s32 1, %s1208_s14  ;;  %s1212_s15 = sphi %s1244_s15, %s1561_s15   ;;  %s1208_s14 = sphi %s1242_s14, %s1560_s14   ;;  %s1204_s13 = sphi %s1240_s13, %s1559_s13   ;;  %s1200_s12 = sphi %s1238_s12, %s1558_s12  }
   0x9   : > { %s45_s18 = ssub.s32 %s1212_s15, %s1259_s16  ;;  %p55_p0 = scmp.ne.s32.totalorder %s1208_s14, %s1204_s13 }
   0xa   : > { %p46_p1 = scmp.eq.s32.totalorder %s45_s18, 0  ;;  %p56_p2 = scmp.eq.s32.totalorder %s1212_s15, 0 }
   0xb   : > { %p1013_p4 = scmp.lt.s32.totalorder %s1212_s15, 2  ;;  %s149_s20 = sand.u32 1, %s1212_s15  }
   0xc   : > { %s1270_s19 = scalar_select %p46_p1, %s1208_s14, %s48_s17  }
   0xd   : > { %p57_p5 = por %p56_p2, %p55_p0  ;;  %s151_s21 = sand.u32 1, %s1208_s14  }
   0xe   : > { %s982_s22 = smul.u32 624, %s151_s21  ;;  %s1287_s4 = scalar_lea.sflag [#allocation6], %s149_s20 }
   0xf   : > { %p1279_p6 = pnand %p1013_p4, %p57_p5  ;;  %s980_s24 = smul.u32 48, %s1212_s15 }
  0x10   : > { %s153_s28 = scalar_lea.vmem [#allocation5], %s982_s22  ;;  %s1059_s9 = scalar_lea.hbm %s1547_s1, 1248 }
  0x11   : > { %s158_s27 = scalar_lea.hbm %s1547_s1, %s980_s24  ;;  %s161_s29 = sshll.u32 %s153_s28, 4  ;;  %s162_s29 = int_to_ptr.vmem [resolvable:$true] %s161_s29 }
  0x12   : > { %s159_s30 = sshll.u32 %s158_s27, 4  ;;  %p1056_p8 = pneg %p1279_p6  ;;  %s160_s30 = int_to_ptr.hbm [resolvable:$true] %s159_s30 }
  0x13   : > { %s1052_s5 = sshra.s32 %s160_s30, 4  ;;  %s1053_s5 = int_to_ptr.hbm [resolvable:$true] %s1052_s5 }
  0x14   : > { %s1054_s6 = scalar_lea.hbm %s1053_s5, 624  ;;  %p1060_p11 = scmp.lt.s32.totalorder %s1053_s5, %s1547_s1 }
  0x15   : > { %p1055_p7 = scmp.ne.s32.totalorder %s1053_s5, %s1054_s6  ;;  %p1061_p12 = scmp.lt.s32.totalorder %s1059_s9, %s1054_s6 }
  0x17   : > { %p1057_p9 = pnand %p1056_p8, %p1055_p7  ;;  %p1062_p13 = por %p1061_p12, %p1060_p11 }
  0x19   : > { %p1058_p10 = pneg %p1057_p9 }
  0x1b   : > { %p1063_p1 = pnand %p1062_p13, %p1058_p10 }
  0x1d   : > { %1066 = shalt.err (!%p1063_p1)
}
  0x1e   : > { %s1214_s17 = smov 1536   ;;  %s1215_s18 = smov 768  }
  0x1f   : > { %s1216_s20 = smov 48   ;;  %s1304_s22 = sadd.s32 4294967295, %s1212_s15  }
  0x20   : > { %1004 = dma.hbm_to_vmem [thread:$0]  (!%p1279_p6), %s160_s30, 9984, %s162_s29, %s1287_s4, %s1214_s17, %s1215_s18, %s1216_s20  }
  0x21   : > { %s946_s24 = sadd.s32 4294967294, %s1212_s15   ;;  %p61_p2 = scmp.ne.s32.totalorder %s1204_s13, %s1200_s12 }
  0x22   : > { %p62_p4 = scmp.eq.s32.totalorder %s1304_s22, 0  ;;  %p111_p5 = scmp.eq.s32.totalorder %s1304_s22, 1 }
  0x23   : > { %p117_p7 = scmp.eq.s32.totalorder %s946_s24, 1  ;;  %p947_p9 = scmp.ge.s32.totalorder %s1212_s15, 1 }
  0x24   : > { %p1314_p10 = por %p62_p4, %p61_p2  ;;  %p1321_p11 = por %p111_p5, %p55_p0 }
  0x25   : > { %p1325_p12 = por %p117_p7, %p61_p2  ;;  %p124_p13 = scmp.lt.s32.totalorder %s1212_s15, 3 }
  0x26   : > { %s1555_s0 = sld [smem:[#allocation12_spill]]  ;;  %s983_s6 = smul.u32 12, %s151_s21 }
  0x27   : > { %p1333_p1 = pnand %p947_p9, %p124_p13  ;;  %s1217_s7 = smov [#allocation2]  }
  0x28   : > { %s138_s8 = sshll.u32 %s1217_s7, 4  ;;  %s176_s9 = smul.u32 12, %s1212_s15  ;;  %s139_s8 = int_to_ptr.vmem [resolvable:$true] %s138_s8 }
  0x29   : > { %p997_p0 = pneg %p1333_p1  ;;  %s175_s10 = scalar_lea.vmem [#allocation7], %s983_s6 }
  0x2a   : > { %s183_s11 = sshll.u32 %s175_s10, 4  ;;  %s179_s20 = scalar_lea.hbm %s1548_s2, %s176_s9  ;;  %s184_s11 = int_to_ptr.vmem [resolvable:$true] %s183_s11 }
  0x2b   : > { %p998_p2 = pnand %p997_p0, %p62_p4  ;;  %s181_s24 = sshll.u32 %s179_s20, 4  ;;  %s182_s24 = int_to_ptr.hbm [resolvable:$true] %s181_s24 }
  0x2c   : > { %s136_s30 = sshll.u32 %s1555_s0, 4  ;;  %s1112_s21 = sshra.s32 %s182_s24, 4  ;;  %s137_s30 = int_to_ptr.hbm [resolvable:$true] %s136_s30  ;;  %s1113_s21 = int_to_ptr.hbm [resolvable:$true] %s1112_s21 }
  0x2d   : > { %1000 = dma.hbm_to_vmem [thread:$0]  (!%p998_p2), %s137_s30, 32, %s139_s8, [#allocation3]  }
  0x2e   : > { %s1114_s28 = scalar_lea.hbm %s1113_s21, 12  ;;  %s1119_s6 = scalar_lea.hbm %s1548_s2, 24 }
  0x2f   : > { %p1115_p5 = scmp.ne.s32.totalorder %s1113_s21, %s1114_s28  ;;  %p1120_p13 = scmp.lt.s32.totalorder %s1113_s21, %s1548_s2 }
  0x30   : > { %p1121_p0 = scmp.lt.s32.totalorder %s1119_s6, %s1114_s28 }
  0x31   : > { %p1117_p7 = pnand %p1115_p5, %p1056_p8 }
  0x32   : > { %p1122_p2 = por %p1121_p0, %p1120_p13 }
  0x33   : > { %p1118_p9 = pneg %p1117_p7 }
  0x35   : > { %p1123_p3 = pnand %p1122_p2, %p1118_p9 }
  0x37   : > { %1126 = shalt.err (!%p1123_p3)
}
  0x38   : > { %1007 = dma.hbm_to_vmem [thread:$0]  (!%p1279_p6), %s182_s24, 192, %s184_s11, %s1287_s4  }
  0x39   : > { %192 = sbr.rel (%p1333_p1) target bundleno = 291 (0x123), region = 32 }
  0x3e   : > { %1187 = dma.done.wait (%p62_p4), [#allocation3], 32  }
  0x3f   : > { %1189 = vsyncadd (%p62_p4), [#allocation3], 4294967264  ;;  %s199_s0 = sand.u32 1, %s1304_s22   ;;  %s1367_s30 = sand.u32 1, %s1204_s13  }
  0x40   : > { %s984_s8 = smul.u32 624, %s1367_s30  ;;  %s200_s23 = scalar_lea.sflag [#allocation6], %s199_s0 }
  0x42   : > { %s1370_s9 = scalar_lea.vmem [#allocation5], %s984_s8 }
  0x43   : > { %1191 = dma.done.wait (%p1314_p10), %s200_s23, 10176  }
  0x44   : > { %1193 = vsyncadd (%p1314_p10), %s200_s23, 4294957120  ;;  %v318_v0 = vld [vmem:[%s1370_s9 + $0x248] sm:$0x33]  ;;  %vm512_vm0 = vcmask 1043456   ;;  %v312_v1 = vld [vmem:[%s1370_s9 + $0x218] sm:$0xff]  ;;  %vm508_vm1 = vcmask 818176  }
  0x45   : > { %v306_v2 = vld [vmem:[%s1370_s9 + $0x1e8] sm:$0xff]  ;;  %v469_v3 = vunpack.c.l.bf16 %v318_v0  ;;  %v470_v4 = vunpack.c.h.bf16 %v318_v0  ;;  %v457_v5 = vunpack.c.l.bf16 %v312_v1  ;;  %v458_v6 = vunpack.c.h.bf16 %v312_v1  ;;  %v317_v7 = vld [vmem:[%s1370_s9 + $0x240] sm:$0x33]  ;;  %v311_v8 = vld [vmem:[%s1370_s9 + $0x210] sm:$0xff]  ;;  %s985_s4 = smul.u32 12, %s1367_s30  ;;  %s828_s28 = scalar_lea.sflag [#allocation4], %s1367_s30 }
  0x46   : > { %v468_v9 = vunpack.c.h.bf16 %v317_v7  ;;  %v300_v10 = vld [vmem:[%s1370_s9 + $0x1b8] sm:$0xff]  ;;  %v305_v11 = vld [vmem:[%s1370_s9 + $0x1e0] sm:$0xff]  ;;  %v445_v12 = vunpack.c.l.bf16 %v306_v2  ;;  %v446_v13 = vunpack.c.h.bf16 %v306_v2  ;;  %v467_v14 = vunpack.c.l.bf16 %v317_v7  ;;  %v299_v16 = vld [vmem:[%s1370_s9 + $0x1b0] sm:$0xff]  ;;  %s986_s5 = smul.u32 24, %s1367_s30  ;;  %s1162_s0 = scalar_lea.hbm %s1549_s3, 48 }
  0x47   : > { %957 = vmatpush.msk.msra.mxu2 %vm512_vm0, %v469_v3  ;;  %959 = vmatpush.msk.msra.mxu3 %vm512_vm0, %v470_v4  ;;  %v456_v15 = vunpack.c.h.bf16 %v311_v8  ;;  %v294_v17 = vld [vmem:[%s1370_s9 + $0x188] sm:$0xff]  ;;  %v455_v18 = vunpack.c.l.bf16 %v311_v8  ;;  %v444_v19 = vunpack.c.h.bf16 %v305_v11  ;;  %v433_v20 = vunpack.c.l.bf16 %v300_v10  ;;  %v293_v22 = vld [vmem:[%s1370_s9 + $0x180] sm:$0xff]  ;;  %v288_v23 = vld [vmem:[%s1370_s9 + $0x158] sm:$0xff]  ;;  %s1493_s25 = scalar_lea.vmem [#allocation7], %s985_s4  ;;  %s981_s17 = smul.u32 24, %s1304_s22 }
  0x48   : > { %955 = vmatpush.msk.msra.mxu1 %vm512_vm0, %v468_v9  ;;  %v434_v21 = vunpack.c.h.bf16 %v300_v10  ;;  %953 = vmatpush.msk.msra.mxu0 %vm512_vm0, %v467_v14  ;;  %v443_v24 = vunpack.c.l.bf16 %v305_v11  ;;  %v432_v25 = vunpack.c.h.bf16 %v299_v16  ;;  %v421_v26 = vunpack.c.l.bf16 %v294_v17  ;;  %v287_v28 = vld [vmem:[%s1370_s9 + $0x150] sm:$0xff]  ;;  %v282_v29 = vld [vmem:[%s1370_s9 + $0x128] sm:$0xff]  ;;  %v281_v34 = vld [vmem:[%s1370_s9 + $0x120] sm:$0xff]  ;;  %s1500_s11 = scalar_lea.vmem [#allocation8], %s986_s5 }
  0x49   : > { %593 = vmatpush.msra.mxu2 %v457_v5  ;;  %613 = vmatpush.msra.mxu3 %v458_v6  ;;  %v422_v27 = vunpack.c.h.bf16 %v294_v17  ;;  %v431_v30 = vunpack.c.l.bf16 %v299_v16  ;;  %v420_v31 = vunpack.c.h.bf16 %v293_v22  ;;  %v409_v32 = vunpack.c.l.bf16 %v288_v23  ;;  %v276_v35 = vld [vmem:[%s1370_s9 + $0xf8] sm:$0xff]  ;;  %v275_v40 = vld [vmem:[%s1370_s9 + $0xf0] sm:$0xff]  ;;  %v270_v41 = vld [vmem:[%s1370_s9 + $0xc8] sm:$0xff]  ;;  %s839_s24 = scalar_lea.hbm %s1549_s3, %s981_s17  ;;  %s841_s22 = sshll.u32 %s1500_s11, 4  ;;  %s842_s22 = int_to_ptr.vmem [resolvable:$true] %s841_s22 }
  0x4a   : > { %573 = vmatpush.msra.mxu1 %v456_v15  ;;  %553 = vmatpush.msra.mxu0 %v455_v18  ;;  %v410_v33 = vunpack.c.h.bf16 %v288_v23  ;;  %v419_v36 = vunpack.c.l.bf16 %v293_v22  ;;  %v408_v37 = vunpack.c.h.bf16 %v287_v28  ;;  %v397_v38 = vunpack.c.l.bf16 %v282_v29  ;;  %v269_v46 = vld [vmem:[%s1370_s9 + $0xc0] sm:$0xff]  ;;  %v264_v47 = vld [vmem:[%s1370_s9 + $0x98] sm:$0xff]  ;;  %v263_v52 = vld [vmem:[%s1370_s9 + $0x90] sm:$0xff]  ;;  %s843_s21 = sshll.u32 %s839_s24, 4  ;;  %s844_s21 = int_to_ptr.hbm [resolvable:$true] %s843_s21 }
  0x4b   : > { %594 = vmatpush.msra.mxu2 %v445_v12  ;;  %614 = vmatpush.msra.mxu3 %v446_v13  ;;  %v398_v39 = vunpack.c.h.bf16 %v282_v29  ;;  %v407_v42 = vunpack.c.l.bf16 %v287_v28  ;;  %v396_v43 = vunpack.c.h.bf16 %v281_v34  ;;  %v385_v44 = vunpack.c.l.bf16 %v276_v35  ;;  %v258_v53 = vld [vmem:[%s1370_s9 + $0x68] sm:$0xff]  ;;  %v257_v58 = vld [vmem:[%s1370_s9 + $0x60] sm:$0xff]  ;;  %v252_v59 = vld [vmem:[%s1370_s9 + $0x38] sm:$0xff]  ;;  %s1156_s29 = sshra.s32 %s844_s21, 4  ;;  %s1157_s29 = int_to_ptr.hbm [resolvable:$true] %s1156_s29 }
  0x4c   : > { %574 = vmatpush.msra.mxu1 %v444_v19  ;;  %554 = vmatpush.msra.mxu0 %v443_v24  ;;  %v386_v45 = vunpack.c.h.bf16 %v276_v35  ;;  %v395_v48 = vunpack.c.l.bf16 %v281_v34  ;;  %v384_v49 = vunpack.c.h.bf16 %v275_v40  ;;  %v373_v50 = vunpack.c.l.bf16 %v270_v41  ;;  %v251_v0 = vld [vmem:[%s1370_s9 + $0x30] sm:$0xff]  ;;  %v246_v1 = vld [vmem:[%s1370_s9 + $0x8] sm:$0xff]  ;;  %v320_v6 = vld [vmem:[%s1370_s9 + $0x258] sm:$0x33]  ;;  %s1158_s7 = scalar_lea.hbm %s1157_s29, 24  ;;  %p1163_p4 = scmp.lt.s32.totalorder %s1157_s29, %s1549_s3 }
  0x4d   : > { %595 = vmatpush.msra.mxu2 %v433_v20  ;;  %615 = vmatpush.msra.mxu3 %v434_v21  ;;  %v374_v51 = vunpack.c.h.bf16 %v270_v41  ;;  %v383_v54 = vunpack.c.l.bf16 %v275_v40  ;;  %v372_v55 = vunpack.c.h.bf16 %v269_v46  ;;  %v361_v56 = vunpack.c.l.bf16 %v264_v47  ;;  %v245_v9 = vld [vmem:[%s1370_s9] sm:$0xff]  ;;  %v314_v12 = vld [vmem:[%s1370_s9 + $0x228] sm:$0xff]  ;;  %v319_v15 = vld [vmem:[%s1370_s9 + $0x250] sm:$0x33]  ;;  %p1159_p3 = scmp.ne.s32.totalorder %s1157_s29, %s1158_s7  ;;  %p1164_p10 = scmp.lt.s32.totalorder %s1162_s0, %s1158_s7 }
  0x4e   : > { %575 = vmatpush.msra.mxu1 %v432_v25  ;;  %555 = vmatpush.msra.mxu0 %v431_v30  ;;  %v362_v57 = vunpack.c.h.bf16 %v264_v47  ;;  %v371_v60 = vunpack.c.l.bf16 %v269_v46  ;;  %v360_v61 = vunpack.c.h.bf16 %v263_v52  ;;  %v349_v62 = vunpack.c.l.bf16 %v258_v53  ;;  %v308_v16 = vld [vmem:[%s1370_s9 + $0x1f8] sm:$0xff]  ;;  %v313_v21 = vld [vmem:[%s1370_s9 + $0x220] sm:$0xff]  ;;  %v302_v23 = vld [vmem:[%s1370_s9 + $0x1c8] sm:$0xff] }
  0x4f   : > { %596 = vmatpush.msra.mxu2 %v421_v26  ;;  %616 = vmatpush.msra.mxu3 %v422_v27  ;;  %v350_v63 = vunpack.c.h.bf16 %v258_v53  ;;  %v359_v2 = vunpack.c.l.bf16 %v263_v52  ;;  %v348_v3 = vunpack.c.h.bf16 %v257_v58  ;;  %v337_v4 = vunpack.c.l.bf16 %v252_v59  ;;  %v307_v27 = vld [vmem:[%s1370_s9 + $0x1f0] sm:$0xff]  ;;  %v296_v30 = vld [vmem:[%s1370_s9 + $0x198] sm:$0xff]  ;;  %p1160_p6 = pnand %p1159_p3, %p1321_p11  ;;  %p1165_p1 = por %p1164_p10, %p1163_p4 }
  0x50   : > { %576 = vmatpush.msra.mxu1 %v420_v31  ;;  %556 = vmatpush.msra.mxu0 %v419_v36  ;;  %v338_v5 = vunpack.c.h.bf16 %v252_v59  ;;  %v347_v7 = vunpack.c.l.bf16 %v257_v58  ;;  %v336_v8 = vunpack.c.h.bf16 %v251_v0  ;;  %v325_v10 = vunpack.c.l.bf16 %v246_v1  ;;  %v290_v36 = vld [vmem:[%s1370_s9 + $0x168] sm:$0xff] }
  0x51   : > { %597 = vmatpush.msra.mxu2 %v409_v32  ;;  %617 = vmatpush.msra.mxu3 %v410_v33  ;;  %v326_v11 = vunpack.c.h.bf16 %v246_v1  ;;  %v473_v13 = vunpack.c.l.bf16 %v320_v6  ;;  %v474_v14 = vunpack.c.h.bf16 %v320_v6  ;;  %v335_v17 = vunpack.c.l.bf16 %v251_v0  ;;  %v301_v33 = vld [vmem:[%s1370_s9 + $0x1c0] sm:$0xff]  ;;  %p1161_p8 = pneg %p1160_p6 }
  0x52   : > { %577 = vmatpush.msra.mxu1 %v408_v37  ;;  %557 = vmatpush.msra.mxu0 %v407_v42  ;;  %v324_v18 = vunpack.c.h.bf16 %v245_v9  ;;  %v461_v19 = vunpack.c.l.bf16 %v314_v12  ;;  %v462_v20 = vunpack.c.h.bf16 %v314_v12  ;;  %v472_v22 = vunpack.c.h.bf16 %v319_v15  ;;  %v284_v42 = vld [vmem:[%s1370_s9 + $0x138] sm:$0xff] }
  0x53   : > { %598 = vmatpush.msra.mxu2 %v397_v38  ;;  %618 = vmatpush.msra.mxu3 %v398_v39  ;;  %v323_v24 = vunpack.c.l.bf16 %v245_v9  ;;  %v449_v25 = vunpack.c.l.bf16 %v308_v16  ;;  %v450_v26 = vunpack.c.h.bf16 %v308_v16  ;;  %v471_v28 = vunpack.c.l.bf16 %v319_v15  ;;  %v295_v39 = vld [vmem:[%s1370_s9 + $0x190] sm:$0xff]  ;;  %v322_v16 = vld [vmem:[%s1370_s9 + $0x268] sm:$0x33]  ;;  %p1166_p5 = pnand %p1165_p1, %p1161_p8 }
  0x54   : > { %578 = vmatpush.msra.mxu1 %v396_v43  ;;  %558 = vmatpush.msra.mxu0 %v395_v48  ;;  %v460_v29 = vunpack.c.h.bf16 %v313_v21  ;;  %v437_v31 = vunpack.c.l.bf16 %v302_v23  ;;  %v438_v32 = vunpack.c.h.bf16 %v302_v23  ;;  %v459_v34 = vunpack.c.l.bf16 %v313_v21  ;;  %v278_v48 = vld [vmem:[%s1370_s9 + $0x108] sm:$0xff]  ;;  %v316_v21 = vld [vmem:[%s1370_s9 + $0x238] sm:$0xff] }
  0x55   : > { %599 = vmatpush.msra.mxu2 %v385_v44  ;;  %619 = vmatpush.msra.mxu3 %v386_v45  ;;  %v448_v35 = vunpack.c.h.bf16 %v307_v27  ;;  %v425_v37 = vunpack.c.l.bf16 %v296_v30  ;;  %v426_v38 = vunpack.c.h.bf16 %v296_v30  ;;  %v447_v40 = vunpack.c.l.bf16 %v307_v27  ;;  %v289_v45 = vld [vmem:[%s1370_s9 + $0x160] sm:$0xff]  ;;  %v310_v27 = vld [vmem:[%s1370_s9 + $0x208] sm:$0xff]  ;;  %v247_v30 = vld [vmem:[%s1370_s9 + $0x10] sm:$0xff] }
  0x56   : > { %579 = vmatpush.msra.mxu1 %v384_v49  ;;  %559 = vmatpush.msra.mxu0 %v383_v54  ;;  %v436_v41 = vunpack.c.h.bf16 %v301_v33  ;;  %v413_v43 = vunpack.c.l.bf16 %v290_v36  ;;  %v414_v44 = vunpack.c.h.bf16 %v290_v36  ;;  %v435_v46 = vunpack.c.l.bf16 %v301_v33  ;;  %v272_v54 = vld [vmem:[%s1370_s9 + $0xd8] sm:$0xff]  ;;  %v321_v36 = vld [vmem:[%s1370_s9 + $0x260] sm:$0x33] }
  0x57   : > { %600 = vmatpush.msra.mxu2 %v373_v50  ;;  %620 = vmatpush.msra.mxu3 %v374_v51  ;;  %v424_v47 = vunpack.c.h.bf16 %v295_v39  ;;  %v401_v49 = vunpack.c.l.bf16 %v284_v42  ;;  %v402_v50 = vunpack.c.h.bf16 %v284_v42  ;;  %v283_v51 = vld [vmem:[%s1370_s9 + $0x130] sm:$0xff]  ;;  %v423_v52 = vunpack.c.l.bf16 %v295_v39  ;;  %v304_v33 = vld [vmem:[%s1370_s9 + $0x1d8] sm:$0xff]  ;;  %v298_v39 = vld [vmem:[%s1370_s9 + $0x1a8] sm:$0xff] }
  0x58   : > { %580 = vmatpush.msra.mxu1 %v372_v55  ;;  %560 = vmatpush.msra.mxu0 %v371_v60  ;;  %v412_v53 = vunpack.c.h.bf16 %v289_v45  ;;  %v389_v55 = vunpack.c.l.bf16 %v278_v48  ;;  %v411_v58 = vunpack.c.l.bf16 %v289_v45  ;;  %v400_v59 = vunpack.c.h.bf16 %v283_v51  ;;  %v266_v60 = vld [vmem:[%s1370_s9 + $0xa8] sm:$0xff] }
  0x59   : > { %601 = vmatpush.msra.mxu2 %v361_v56  ;;  %621 = vmatpush.msra.mxu3 %v362_v57  ;;  %v390_v56 = vunpack.c.h.bf16 %v278_v48  ;;  %v277_v57 = vld [vmem:[%s1370_s9 + $0x100] sm:$0xff]  ;;  %v399_v0 = vunpack.c.l.bf16 %v283_v51  ;;  %v478_v23 = vunpack.c.h.bf16 %v322_v16  ;;  %v476_v42 = vunpack.c.h.bf16 %v321_v36  ;;  %v303_v51 = vld [vmem:[%s1370_s9 + $0x1d0] sm:$0xff] }
  0x5a   : > { %581 = vmatpush.msra.mxu1 %v360_v61  ;;  %561 = vmatpush.msra.mxu0 %v359_v2  ;;  %v377_v61 = vunpack.c.l.bf16 %v272_v54  ;;  %v388_v1 = vunpack.c.h.bf16 %v277_v57  ;;  %v260_v2 = vld [vmem:[%s1370_s9 + $0x78] sm:$0xff]  ;;  %v387_v6 = vunpack.c.l.bf16 %v277_v57  ;;  %v429_v45 = vunpack.c.l.bf16 %v298_v39  ;;  %v297_v57 = vld [vmem:[%s1370_s9 + $0x1a0] sm:$0xff] }
  0x5b   : > { %602 = vmatpush.msra.mxu2 %v349_v62  ;;  %622 = vmatpush.msra.mxu3 %v350_v63  ;;  %v378_v62 = vunpack.c.h.bf16 %v272_v54  ;;  %v271_v63 = vld [vmem:[%s1370_s9 + $0xd0] sm:$0xff]  ;;  %v353_v9 = vunpack.c.l.bf16 %v260_v2  ;;  %vm812_vm2 = vcmask 1045508   ;;  %vm810_vm3 = vcmask 1041408  }
  0x5c   : > { %582 = vmatpush.msra.mxu1 %v348_v3  ;;  %562 = vmatpush.msra.mxu0 %v347_v7  ;;  %v365_v3 = vunpack.c.l.bf16 %v266_v60  ;;  %v376_v7 = vunpack.c.h.bf16 %v271_v63 }
  0x5d   : > { %603 = vmatpush.msra.mxu2 %v337_v4  ;;  %623 = vmatpush.msra.mxu3 %v338_v5  ;;  %v366_v4 = vunpack.c.h.bf16 %v266_v60  ;;  %v265_v5 = vld [vmem:[%s1370_s9 + $0xa0] sm:$0xff] }
  0x5e   : > { %583 = vmatpush.msra.mxu1 %v336_v8  ;;  %563 = vmatpush.msra.mxu0 %v335_v17  ;;  %v254_v8 = vld [vmem:[%s1370_s9 + $0x48] sm:$0xff]  ;;  %v364_v12 = vunpack.c.h.bf16 %v265_v5  ;;  %v259_v17 = vld [vmem:[%s1370_s9 + $0x70] sm:$0xff] }
  0x5f   : > { %604 = vmatpush.msra.mxu2 %v325_v10  ;;  %624 = vmatpush.msra.mxu3 %v326_v11  ;;  %v354_v10 = vunpack.c.h.bf16 %v260_v2  ;;  %v375_v11 = vunpack.c.l.bf16 %v271_v63  ;;  %v342_v15 = vunpack.c.h.bf16 %v254_v8  ;;  %v291_v63 = vld [vmem:[%s1370_s9 + $0x170] sm:$0xff] }
  0x60   : > { %584 = vmatpush.msra.mxu1 %v324_v18  ;;  %564 = vmatpush.msra.mxu0 %v323_v24  ;;  %v253_v24 = vld [vmem:[%s1370_s9 + $0x40] sm:$0xff] }
  0x61   : > { %965 = vmatpush.msk.msrb.mxu2 %vm512_vm0, %v473_v13  ;;  %967 = vmatpush.msk.msrb.mxu3 %vm512_vm0, %v474_v14  ;;  %v248_v13 = vld [vmem:[%s1370_s9 + $0x18] sm:$0xff]  ;;  %v341_v14 = vunpack.c.l.bf16 %v254_v8  ;;  %v427_v8 = vunpack.c.l.bf16 %v297_v57 }
  0x62   : > { %963 = vmatpush.msk.msrb.mxu1 %vm512_vm0, %v472_v22  ;;  %961 = vmatpush.msk.msrb.mxu0 %vm512_vm0, %v471_v28  ;;  %v329_v18 = vunpack.c.l.bf16 %v248_v13  ;;  %v477_v22 = vunpack.c.l.bf16 %v322_v16  ;;  %v465_v28 = vunpack.c.l.bf16 %v316_v21 }
  0x63   : > { %673 = vmatpush.msrb.mxu2 %v461_v19  ;;  %693 = vmatpush.msrb.mxu3 %v462_v20  ;;  %v330_v19 = vunpack.c.h.bf16 %v248_v13  ;;  %v1435_v20 = vld [vmem:[#allocation2] sm:$0x3] }
  0x64   : > { %653 = vmatpush.msrb.mxu1 %v460_v29  ;;  %633 = vmatpush.msrb.mxu0 %v459_v34  ;;  %v466_v29 = vunpack.c.h.bf16 %v316_v21  ;;  %v453_v34 = vunpack.c.l.bf16 %v310_v27  ;;  %v256_v21 = vld [vmem:[%s1370_s9 + $0x58] sm:$0xff] }
  0x65   : > { %674 = vmatpush.msrb.mxu2 %v449_v25  ;;  %694 = vmatpush.msrb.mxu3 %v450_v26  ;;  %v363_v25 = vunpack.c.l.bf16 %v265_v5  ;;  %v352_v26 = vunpack.c.h.bf16 %v259_v17  ;;  %v416_v5 = vunpack.c.h.bf16 %v291_v63 }
  0x66   : > { %654 = vmatpush.msrb.mxu1 %v448_v35  ;;  %634 = vmatpush.msrb.mxu0 %v447_v40  ;;  %v454_v35 = vunpack.c.h.bf16 %v310_v27  ;;  %v441_v40 = vunpack.c.l.bf16 %v304_v33  ;;  %v250_v27 = vld [vmem:[%s1370_s9 + $0x28] sm:$0xff] }
  0x67   : > { %675 = vmatpush.msrb.mxu2 %v437_v31  ;;  %695 = vmatpush.msrb.mxu3 %v438_v32  ;;  %v351_v31 = vunpack.c.l.bf16 %v259_v17  ;;  %v340_v32 = vunpack.c.h.bf16 %v253_v24  ;;  %v273_v17 = vld [vmem:[%s1370_s9 + $0xe0] sm:$0xff] }
  0x68   : > { %655 = vmatpush.msrb.mxu1 %v436_v41  ;;  %635 = vmatpush.msrb.mxu0 %v435_v46  ;;  %v315_v41 = vld [vmem:[%s1370_s9 + $0x230] sm:$0xff]  ;;  %v309_v46 = vld [vmem:[%s1370_s9 + $0x200] sm:$0xff] }
  0x69   : > { %676 = vmatpush.msrb.mxu2 %v425_v37  ;;  %696 = vmatpush.msrb.mxu3 %v426_v38  ;;  %v339_v37 = vunpack.c.l.bf16 %v253_v24  ;;  %v328_v38 = vunpack.c.h.bf16 %v247_v30  ;;  %v464_v48 = vunpack.c.h.bf16 %v315_v41 }
  0x6a   : > { %656 = vmatpush.msrb.mxu1 %v424_v47  ;;  %636 = vmatpush.msrb.mxu0 %v423_v52  ;;  %v292_v47 = vld [vmem:[%s1370_s9 + $0x178] sm:$0xff]  ;;  %v286_v52 = vld [vmem:[%s1370_s9 + $0x148] sm:$0xff] }
  0x6b   : > { %677 = vmatpush.msrb.mxu2 %v413_v43  ;;  %697 = vmatpush.msrb.mxu3 %v414_v44  ;;  %v442_v43 = vunpack.c.h.bf16 %v304_v33  ;;  %v327_v44 = vunpack.c.l.bf16 %v247_v30  ;;  %v417_v54 = vunpack.c.l.bf16 %v292_v47  ;;  %v405_v60 = vunpack.c.l.bf16 %v286_v52  ;;  %v261_v33 = vld [vmem:[%s1370_s9 + $0x80] sm:$0xff] }
  0x6c   : > { %657 = vmatpush.msrb.mxu1 %v412_v53  ;;  %637 = vmatpush.msrb.mxu0 %v411_v58  ;;  %v452_v53 = vunpack.c.h.bf16 %v309_v46  ;;  %v280_v58 = vld [vmem:[%s1370_s9 + $0x118] sm:$0xff]  ;;  %v379_v30 = vunpack.c.l.bf16 %v273_v17 }
  0x6d   : > { %678 = vmatpush.msrb.mxu2 %v401_v49  ;;  %698 = vmatpush.msrb.mxu3 %v402_v50  ;;  %v475_v49 = vunpack.c.l.bf16 %v321_v36  ;;  %v430_v50 = vunpack.c.h.bf16 %v298_v39  ;;  %v393_v2 = vunpack.c.l.bf16 %v280_v58  ;;  %v355_v39 = vunpack.c.l.bf16 %v261_v33 }
  0x6e   : > { %658 = vmatpush.msrb.mxu1 %v400_v59  ;;  %638 = vmatpush.msrb.mxu0 %v399_v0  ;;  %v440_v59 = vunpack.c.h.bf16 %v303_v51  ;;  %v274_v0 = vld [vmem:[%s1370_s9 + $0xe8] sm:$0xff] }
  0x6f   : > { %679 = vmatpush.msrb.mxu2 %v389_v55  ;;  %699 = vmatpush.msrb.mxu3 %v390_v56  ;;  %v463_v55 = vunpack.c.l.bf16 %v315_v41  ;;  %v418_v56 = vunpack.c.h.bf16 %v292_v47 }
  0x70   : > { %659 = vmatpush.msrb.mxu1 %v388_v1  ;;  %639 = vmatpush.msrb.mxu0 %v387_v6  ;;  %v428_v1 = vunpack.c.h.bf16 %v297_v57  ;;  %v381_v6 = vunpack.c.l.bf16 %v274_v0 }
  0x71   : > { %680 = vmatpush.msrb.mxu2 %v377_v61  ;;  %700 = vmatpush.msrb.mxu3 %v378_v62  ;;  %v451_v61 = vunpack.c.l.bf16 %v309_v46  ;;  %v406_v62 = vunpack.c.h.bf16 %v286_v52 }
  0x72   : > { %660 = vmatpush.msrb.mxu1 %v376_v7  ;;  %640 = vmatpush.msrb.mxu0 %v375_v11  ;;  %v285_v7 = vld [vmem:[%s1370_s9 + $0x140] sm:$0xff]  ;;  %v279_v11 = vld [vmem:[%s1370_s9 + $0x110] sm:$0xff] }
  0x73   : > { %681 = vmatpush.msrb.mxu2 %v365_v3  ;;  %701 = vmatpush.msrb.mxu3 %v366_v4  ;;  %v439_v3 = vunpack.c.l.bf16 %v303_v51  ;;  %v394_v4 = vunpack.c.h.bf16 %v280_v58  ;;  %v404_v13 = vunpack.c.h.bf16 %v285_v7  ;;  %v391_v24 = vunpack.c.l.bf16 %v279_v11 }
  0x74   : > { %661 = vmatpush.msrb.mxu1 %v364_v12  ;;  %958 = vmatmul.msk.f32.vlgmr.msra.gmra.mxu2 %vm508_vm1, %v1435_v20  ;;  %v415_v12 = vunpack.c.l.bf16 %v291_v63 }
  0x75   : > { %682 = vmatpush.msrb.mxu2 %v353_v9  ;;  %702 = vmatpush.msrb.mxu3 %v354_v10  ;;  %v382_v9 = vunpack.c.h.bf16 %v274_v0  ;;  %v268_v10 = vld [vmem:[%s1370_s9 + $0xb8] sm:$0xff] }
  0x76   : > { %960 = vmatmul.msk.f32.vlgmr.msra.gmra.mxu3 %vm508_vm1, %v1435_v20  ;;  %641 = vmatpush.msrb.mxu0 %v363_v25  ;;  %v370_v16 = vunpack.c.h.bf16 %v268_v10  ;;  %v380_v25 = vunpack.c.h.bf16 %v273_v17 }
  0x77   : > { %683 = vmatpush.msrb.mxu2 %v341_v14  ;;  %703 = vmatpush.msrb.mxu3 %v342_v15  ;;  %v262_v14 = vld [vmem:[%s1370_s9 + $0x88] sm:$0xff]  ;;  %v369_v15 = vunpack.c.l.bf16 %v268_v10 }
  0x78   : > { %662 = vmatpush.msrb.mxu1 %v352_v26  ;;  %642 = vmatpush.msrb.mxu0 %v351_v31  ;;  %v267_v26 = vld [vmem:[%s1370_s9 + $0xb0] sm:$0xff] }
  0x79   : > { %684 = vmatpush.msrb.mxu2 %v329_v18  ;;  %704 = vmatpush.msrb.mxu3 %v330_v19  ;;  %v403_v18 = vunpack.c.l.bf16 %v285_v7  ;;  %v392_v19 = vunpack.c.h.bf16 %v279_v11  ;;  %v368_v31 = vunpack.c.h.bf16 %v267_v26  ;;  %v367_v36 = vunpack.c.l.bf16 %v267_v26 }
  0x7a   : > { %663 = vmatpush.msrb.mxu1 %v340_v32  ;;  %643 = vmatpush.msrb.mxu0 %v339_v37  ;;  %v333_v32 = vunpack.c.l.bf16 %v250_v27  ;;  %v356_v37 = vunpack.c.h.bf16 %v261_v33 }
  0x7b   : > { %973 = vmatpush.msk.msra.mxu2 %vm512_vm0, %v477_v22  ;;  %975 = vmatpush.msk.msra.mxu3 %vm512_vm0, %v478_v23  ;;  %v357_v22 = vunpack.c.l.bf16 %v262_v14  ;;  %v358_v23 = vunpack.c.h.bf16 %v262_v14 }
  0x7c   : > { %664 = vmatpush.msrb.mxu1 %v328_v38  ;;  %644 = vmatpush.msrb.mxu0 %v327_v44  ;;  %v249_v38 = vld [vmem:[%s1370_s9 + $0x20] sm:$0xff] }
  0x7d   : > { %753 = vmatpush.msra.mxu2 %v465_v28  ;;  %773 = vmatpush.msra.mxu3 %v466_v29  ;;  %v345_v28 = vunpack.c.l.bf16 %v256_v21  ;;  %v346_v29 = vunpack.c.h.bf16 %v256_v21  ;;  %v480_v44 = vld [vmem:[%s1493_s25] sm:$0xff] }
  0x7e   : > { %956 = vmatmul.msk.f32.vlgmr.msra.gmra.mxu1 %vm508_vm1, %v1435_v20  ;;  %954 = vmatmul.msk.f32.vlgmr.msra.gmra.mxu0 %vm508_vm1, %v1435_v20  ;;  %v487_v46 = vperm.slane %v480_v44, 3  ;;  %v485_v47 = vperm.slane %v480_v44, 1  ;;  %v491_v63 = vperm.slane %v480_v44, 7  ;;  %v489_v0 = vperm.slane %v480_v44, 5 }
  0x7f   : > { %754 = vmatpush.msra.mxu2 %v453_v34  ;;  %774 = vmatpush.msra.mxu3 %v454_v35  ;;  %v334_v34 = vunpack.c.h.bf16 %v250_v27  ;;  %v255_v35 = vld [vmem:[%s1370_s9 + $0x50] sm:$0xff] }
  0x80   : > { %971 = vmatpush.msk.msra.mxu1 %vm512_vm0, %v476_v42  ;;  %969 = vmatpush.msk.msra.mxu0 %vm512_vm0, %v475_v49  ;;  %v343_v41 = vunpack.c.l.bf16 %v255_v35  ;;  %v332_v42 = vunpack.c.h.bf16 %v249_v38 }
  0x81   : > { %755 = vmatpush.msra.mxu2 %v441_v40  ;;  %775 = vmatpush.msra.mxu3 %v442_v43  ;;  %v344_v40 = vunpack.c.h.bf16 %v255_v35  ;;  %v331_v43 = vunpack.c.l.bf16 %v249_v38 }
  0x82   : > { %733 = vmatpush.msra.mxu1 %v464_v48  ;;  %713 = vmatpush.msra.mxu0 %v463_v55 }
  0x83   : > { %756 = vmatpush.msra.mxu2 %v429_v45  ;;  %776 = vmatpush.msra.mxu3 %v430_v50  ;;  %v486_v45 = vperm.slane %v480_v44, 2 }
  0x84   : > { %734 = vmatpush.msra.mxu1 %v452_v53  ;;  %714 = vmatpush.msra.mxu0 %v451_v61  ;;  %v484_v53 = vperm.slane %v480_v44, 0 }
  0x85   : > { %757 = vmatpush.msra.mxu2 %v417_v54  ;;  %777 = vmatpush.msra.mxu3 %v418_v56 }
  0x86   : > { %735 = vmatpush.msra.mxu1 %v440_v59  ;;  %715 = vmatpush.msra.mxu0 %v439_v3  ;;  %v488_v3 = vperm.slane %v480_v44, 4 }
  0x87   : > { %758 = vmatpush.msra.mxu2 %v405_v60  ;;  %778 = vmatpush.msra.mxu3 %v406_v62  ;;  %v490_v62 = vperm.slane %v480_v44, 6 }
  0x88   : > { %736 = vmatpush.msra.mxu1 %v428_v1  ;;  %716 = vmatpush.msra.mxu0 %v427_v8 }
  0x89   : > { %759 = vmatpush.msra.mxu2 %v393_v2  ;;  %779 = vmatpush.msra.mxu3 %v394_v4 }
  0x8a   : > { %737 = vmatpush.msra.mxu1 %v416_v5  ;;  %966 = vmatmul.msk.f32.vlgmr.msrb.gmra.mxu2 %vm508_vm1, %v1435_v20 }
  0x8b   : > { %760 = vmatpush.msra.mxu2 %v381_v6  ;;  %780 = vmatpush.msra.mxu3 %v382_v9 }
  0x8c   : > { %968 = vmatmul.msk.f32.vlgmr.msrb.gmra.mxu3 %vm508_vm1, %v1435_v20  ;;  %717 = vmatpush.msra.mxu0 %v415_v12 }
  0x8d   : > { %738 = vmatpush.msra.mxu1 %v404_v13  ;;  %761 = vmatpush.msra.mxu2 %v369_v15  ;;  %v481_v13 = vld [vmem:[%s1493_s25 + $0x8] sm:$0xf] }
  0x8e   : > { %781 = vmatpush.msra.mxu3 %v370_v16  ;;  %718 = vmatpush.msra.mxu0 %v403_v18  ;;  %v493_v17 = vperm.slane %v481_v13, 1  ;;  %v494_v18 = vperm.slane %v481_v13, 2  ;;  %v492_v21 = vperm.slane %v481_v13, 0 }
  0x8f   : > { %739 = vmatpush.msra.mxu1 %v392_v19  ;;  %762 = vmatpush.msra.mxu2 %v357_v22  ;;  %v495_v19 = vperm.slane %v481_v13, 3 }
  0x90   : > { %782 = vmatpush.msra.mxu3 %v358_v23  ;;  %719 = vmatpush.msra.mxu0 %v391_v24 }
  0x91   : > { %740 = vmatpush.msra.mxu1 %v380_v25  ;;  %763 = vmatpush.msra.mxu2 %v345_v28 }
  0x92   : > { %783 = vmatpush.msra.mxu3 %v346_v29  ;;  %964 = vmatmul.msk.f32.vlgmr.msrb.gmra.mxu1 %vm508_vm1, %v1435_v20 }
  0x93   : > { %720 = vmatpush.msra.mxu0 %v379_v30  ;;  %741 = vmatpush.msra.mxu1 %v368_v31 }
  0x94   : > { %764 = vmatpush.msra.mxu2 %v333_v32  ;;  %784 = vmatpush.msra.mxu3 %v334_v34 }
  0x95   : > { %962 = vmatmul.msk.f32.vlgmr.msrb.gmra.mxu0 %vm508_vm1, %v1435_v20  ;;  %974 = vmatmul.msk.f32.vlgmr.msra.gmra.mxu2 %vm508_vm1, %v1435_v20 }
  0x96   : > { %976 = vmatmul.msk.f32.vlgmr.msra.gmra.mxu3 %vm508_vm1, %v1435_v20  ;;  %721 = vmatpush.msra.mxu0 %v367_v36 }
  0x97   : > { %742 = vmatpush.msra.mxu1 %v356_v37 }
  0x98   : > { %722 = vmatpush.msra.mxu0 %v355_v39 }
  0x99   : > { %743 = vmatpush.msra.mxu1 %v344_v40 }
  0x9a   : > { %723 = vmatpush.msra.mxu0 %v343_v41 }
  0x9b   : > { %744 = vmatpush.msra.mxu1 %v332_v42 }
  0x9c   : > { %972 = vmatmul.msk.f32.vlgmr.msra.gmra.mxu1 %vm508_vm1, %v1435_v20  ;;  %724 = vmatpush.msra.mxu0 %v331_v43 }
  0x9d   : > { %970 = vmatmul.msk.f32.vlgmr.msra.gmra.mxu0 %vm508_vm1, %v1435_v20 }
  0xf7   : > { %v606_v48 = vpop.f32.mrf.mxu2 }
  0xf8   : > { %v607_v50 = vadd.f32 %v606_v48, %v486_v45 }
  0xf9   : > { %v626_v49 = vpop.f32.mrf.mxu3 }
  0xfa   : > { %v627_v51 = vadd.f32 %v626_v49, %v487_v46  ;;  %v802_v55 = vrot.slane %v607_v50, 4 }
  0xfb   : > { %v586_v52 = vpop.f32.mrf.mxu1  ;;  %v566_v57 = vpop.f32.mrf.mxu0 }
  0xfc   : > { %v587_v54 = vadd.f32 %v586_v52, %v485_v47  ;;  %v803_v56 = vrot.slane %v627_v51, 2  ;;  %v567_v59 = vadd.f32 %v566_v57, %v484_v53 }
  0xfe   : > { %v801_v20 = vrot.slane %v587_v54, 6  ;;  %v813_v58 = vsel %vm812_vm2, %v802_v55, %v803_v56 }
 0x100   : > { %v811_v60 = vsel %vm810_vm3, %v567_v59, %v801_v20 }
 0x101   : > { %v814_v61 = vsel %vm512_vm0, %v811_v60, %v813_v58 }
 0x102   : > { %824 = vst [vmem:[%s1500_s11] sm:$0xff] %v814_v61 }
 0x10d   : > { %v686_v1 = vpop.f32.mrf.mxu2 }
 0x10e   : > { %v687_v5 = vadd.f32 %v686_v1, %v490_v62 }
 0x10f   : > { %v706_v2 = vpop.f32.mrf.mxu3  ;;  %v666_v4 = vpop.f32.mrf.mxu1 }
 0x110   : > { %v707_v6 = vadd.f32 %v706_v2, %v491_v63  ;;  %v667_v7 = vadd.f32 %v666_v4, %v489_v0  ;;  %v805_v8 = vrot.slane %v687_v5, 4 }
 0x112   : > { %v806_v9 = vrot.slane %v707_v6, 2  ;;  %v646_v10 = vpop.f32.mrf.mxu0  ;;  %v804_v11 = vrot.slane %v667_v7, 6 }
 0x113   : > { %v647_v12 = vadd.f32 %v646_v10, %v488_v3 }
 0x114   : > { %v816_v14 = vsel %vm812_vm2, %v805_v8, %v806_v9 }
 0x115   : > { %v815_v15 = vsel %vm810_vm3, %v647_v12, %v804_v11 }
 0x116   : > { %v817_v16 = vsel %vm512_vm0, %v815_v15, %v816_v14 }
 0x117   : > { %825 = vst [vmem:[%s1500_s11 + $0x8] sm:$0xff] %v817_v16 }
 0x118   : > { %v766_v23 = vpop.f32.mrf.mxu2 }
 0x119   : > { %v746_v22 = vpop.f32.mrf.mxu1  ;;  %v767_v25 = vadd.f32 %v766_v23, %v494_v18  ;;  %v786_v26 = vpop.f32.mrf.mxu3 }
 0x11a   : > { %v747_v24 = vadd.f32 %v746_v22, %v493_v17  ;;  %v787_v27 = vadd.f32 %v786_v26, %v495_v19  ;;  %v726_v28 = vpop.f32.mrf.mxu0 }
 0x11b   : > { %v808_v30 = vrot.slane %v767_v25, 4  ;;  %v727_v31 = vadd.f32 %v726_v28, %v492_v21 }
 0x11c   : > { %v807_v29 = vrot.slane %v747_v24, 6  ;;  %v809_v32 = vrot.slane %v787_v27, 2 }
 0x11e   : > { %v818_v33 = vsel %vm810_vm3, %v727_v31, %v807_v29  ;;  %v819_v34 = vsel %vm812_vm2, %v808_v30, %v809_v32 }
 0x11f   : > { %v820_v35 = vsel %vm512_vm0, %v818_v33, %v819_v34 }
 0x120   : > { %826 = vst [vmem:[%s1500_s11 + $0x10] sm:$0xff] %v820_v35 }
 0x121   : > { %1169 = shalt.err (!%p1166_p5)
}
 0x122   : > { %995 = dma.vmem_to_hbm [thread:$0]  (%p1321_p11), %s842_s22, 384, %s844_s21, %s828_s28  }
 0x123 PF: > { %s855_s30 = sand.u32 1, %s1200_s12   ;;  %p1557_p7 = scmp.ge.s32.totalorder %s1212_s15, 2 }
 0x124   : > { %s856_s9 = scalar_lea.sflag [#allocation4], %s855_s30 }
 0x125   : > { %p1009_p9 = pnand %p1557_p7, %p1325_p12 }
 0x127   : > { %p1010_p13 = pneg %p1009_p9 }
 0x129   : > { %1195 = dma.done.wait (%p1010_p13), %s856_s9, 384  }
 0x12a   : > { %1197 = vsyncadd (%p1010_p13), %s856_s9, 4294966912  ;;  %p17_p0 = scmp.ge.s32.totalorder %s1259_s16, 4   ;;  %s1558_s12 = smov %s1204_s13 }
 0x12b   : > { %s1559_s13 = smov %s1208_s14  ;;  %s1560_s14 = smov %s1270_s19 }
 0x12c   : > { %s1561_s15 = smov %s1259_s16  ;;  %19 = sbr.rel (!%p17_p0) target bundleno = 8 (0x8), region = 93 }
 0x131   :  { %862 = vsyncpa [#allocation3], 1 }
 0x132   :  { %864 = vsyncpa [#allocation3 + $0x1], 1 }
 0x133   :  { %865 = vsyncpa [#allocation6], 1 }
 0x134   :  { %867 = vsyncpa [#allocation6 + $0x1], 1 }
 0x135   :  { %868 = vsyncpa [#allocation4], 1 }
 0x136   :  { %870 = vsyncpa [#allocation4 + $0x1], 1 }

</bundles_post_ra>
